<compile_context>
chip_gen: v7x
topology: tpu7x:2x2x1
jax: 0.10.0
libtpu: 0.0.40
codegen_flags: <defaults>
</compile_context>

<pallas_src>
import functools

import jax
import jax.numpy as jnp
from jax import lax
from jax.experimental import pallas as pl
from jax.experimental.pallas import tpu as pltpu


def _round_up(a, m):
    return (a + m - 1) // m * m


def _tensorcores_per_chip():
    """Best-effort detection of 2-TC chips (v7x); falls back to 1 (v5e/v6e)."""
    try:
        kind = jax.devices()[0].device_kind.lower()
    except Exception:
        return 1
    return 2 if ("v7" in kind or "tpu7" in kind) else 1


def lstm_linear_kernel(x_ref, wih_ref, whh_ref, b_ref, wlin_ref, blin_ref,
                       out_ref, gx_ref, *, hidden_size, num_steps):
    """One batch tile: LSTM recurrence over `num_steps` steps + final linear head.

    x_ref    : (Bt, S, F)    f32   batch-major input slice (S = output_length + 1)
    wih_ref  : (F, G4p)      f32   W_ih^T, packed gates [i|f|g|o], lane-padded
    whh_ref  : (H, G4p)      bf16  W_hh^T, packed gates
    b_ref    : (1, G4p)      f32   b_ih + b_hh
    wlin_ref : (H, OLp)      bf16  W_linear^T, lane-padded
    blin_ref : (1, OLp)      f32
    out_ref  : (Bt, OLp)     f32
    gx_ref   : (S, Bt, G4p)  f32   VMEM scratch: hoisted input projection
    """
    H = hidden_size
    Bt = x_ref.shape[0]
    F = x_ref.shape[2]
    G4p = gx_ref.shape[2]

    # ---- Hoisted input projection (independent of h, off the serial critical path).
    wih = wih_ref[...]
    bias = b_ref[...]
    for t in range(num_steps):                        # tiny static loop
        if F == 1:
            # n_features == 1: the projection is a broadcast multiply; an MXU
            # matmul with K=1 would waste the unit.
            gx_ref[t] = x_ref[:, t, :] * wih + bias
        else:
            gx_ref[t] = jnp.dot(x_ref[:, t, :], wih,
                                preferred_element_type=jnp.float32) + bias

    # Lane mask selecting the g (cell-candidate) block -> tanh; other gates sigmoid.
    lane = lax.broadcasted_iota(jnp.int32, (Bt, G4p), 1)
    g_mask = (lane >= 2 * H) & (lane < 3 * H)

    h0 = jnp.zeros((Bt, H), jnp.float32)
    c0 = jnp.zeros((Bt, H), jnp.float32)

    def step(t, carry):
        h, c = carry
        # Only h @ W_hh^T is on the serial path; bf16 operands, f32 accumulation.
        # W_hh is re-read from VMEM each step (cheap) instead of pinning vregs.
        gates = gx_ref[t] + jnp.dot(h.astype(whh_ref.dtype), whh_ref[...],
                                    preferred_element_type=jnp.float32)  # (Bt, G4p)
        # Two full-width EUP passes + a lane select instead of four per-gate passes.
        act = jnp.where(g_mask, jnp.tanh(gates), jax.nn.sigmoid(gates))
        i = act[:, 0 * H:1 * H]
        f = act[:, 1 * H:2 * H]
        g = act[:, 2 * H:3 * H]
        o = act[:, 3 * H:4 * H]
        c_new = f * c + i * g                         # f32 cell math throughout
        h_new = o * jnp.tanh(c_new)
        return (h_new, c_new)

    # lstm_out[:, output_length] == hidden state after (output_length + 1) steps.
    h_sel, _ = lax.fori_loop(0, num_steps, step, (h0, c0), unroll=True)

    out_ref[...] = (jnp.dot(h_sel.astype(wlin_ref.dtype), wlin_ref[...],
                            preferred_element_type=jnp.float32) + blin_ref[...])


def prepare_params(params, *, hidden_size, output_length):
    """One-time weight packing (transpose / lane pad / cast) -- off the hot path."""
    H = hidden_size
    OL = output_length
    G4p = _round_up(4 * H, 128)     # packed gate width padded to full lanes
    OLp = _round_up(OL, 128)        # lane-dense output store

    def pad_cols(a, n):
        return jnp.pad(a, ((0, 0), (0, n - a.shape[1])))

    wih = pad_cols(params["w_ih"].T.astype(jnp.float32), G4p)                  # (F, G4p)
    whh = pad_cols(params["w_hh"].T.astype(jnp.float32), G4p) \
        .astype(jnp.bfloat16)                                                  # (H, G4p)
    b = pad_cols((params["b_ih"] + params["b_hh"]).reshape(1, -1)
                 .astype(jnp.float32), G4p)                                    # (1, G4p)
    wlin = pad_cols(params["w_lin"].T.astype(jnp.float32), OLp) \
        .astype(jnp.bfloat16)                                                  # (H, OLp)
    blin = pad_cols(params["b_lin"].reshape(1, -1).astype(jnp.float32), OLp)   # (1, OLp)

    return {"wih": wih, "whh": whh, "b": b, "wlin": wlin, "blin": blin,
            "hidden_size": H, "output_length": OL}


def basic_lstm_simple_forward(x, packed):
    """Hot path. x: (B, T, n_features) batch-first. Returns (B, output_length)."""
    H = packed["hidden_size"]
    OL = packed["output_length"]
    B, T, F = x.shape
    S = OL + 1
    assert T > OL, "forward indexes lstm_out[:, output_length]"

    G4p = packed["whh"].shape[1]
    OLp = packed["wlin"].shape[1]

    # ---- Batch tiling (generation-aware).
    B_sub = _round_up(B, 8)
    cores = _tensorcores_per_chip()
    # Keep the gx scratch (S, Bt, G4p) f32 within a modest VMEM budget (v7x: 64 MiB).
    gx_budget = 8 * 1024 * 1024
    bt_vmem_cap = max(8, (gx_budget // (S * G4p * 4)) // 8 * 8)
    max_tile = min(512, bt_vmem_cap)          # big single tile on 1-TC chips (v5e/v6e)
    if cores >= 2 and B_sub >= 16:
        # v7x: make >=2 batch tiles so the second TensorCore does work.
        Bt = min(_round_up(pl.cdiv(B_sub, 2), 8), max_tile)
    else:
        Bt = min(B_sub, max_tile)
    B_pad = _round_up(B_sub, Bt)
    num_tiles = B_pad // Bt

    # ---- Input: only the first (output_length + 1) timesteps can affect the output.
    x_used = x[:, :S, :]
    if x_used.dtype != jnp.float32:
        x_used = x_used.astype(jnp.float32)
    if B_pad != B:
        x_used = jnp.pad(x_used, ((0, B_pad - B), (0, 0), (0, 0)))   # (B_pad, S, F)

    kernel = functools.partial(lstm_linear_kernel, hidden_size=H, num_steps=S)

    grid_spec = pltpu.PrefetchScalarGridSpec(
        num_scalar_prefetch=0,
        grid=(num_tiles,),
        in_specs=[
            pl.BlockSpec((Bt, S, F), lambda i: (i, 0, 0)),    # x tile, batch-major
            pl.BlockSpec((F, G4p), lambda i: (0, 0)),         # W_ih^T (f32)
            pl.BlockSpec((H, G4p), lambda i: (0, 0)),         # W_hh^T (bf16)
            pl.BlockSpec((1, G4p), lambda i: (0, 0)),         # bias
            pl.BlockSpec((H, OLp), lambda i: (0, 0)),         # W_lin^T (bf16)
            pl.BlockSpec((1, OLp), lambda i: (0, 0)),         # b_lin
        ],
        out_specs=pl.BlockSpec((Bt, OLp), lambda i: (i, 0)),
        # TODO(synk): for very large output_length, store gx in bf16 / ring-buffer
        #             over time to respect v7x's 64 MiB VMEM.
        scratch_shapes=[pltpu.VMEM((S, Bt, G4p), jnp.float32)],
    )

    out = pl.pallas_call(
        kernel,
        out_shape=jax.ShapeDtypeStruct((B_pad, OLp), jnp.float32),
        grid_spec=grid_spec,
        compiler_params=pltpu.CompilerParams(
            dimension_semantics=("parallel",)),   # batch tiles shard across TCs (v7x)
    )(x_used, packed["wih"], packed["whh"], packed["b"],
      packed["wlin"], packed["blin"])

    return out[:B, :OL]


def reference_forward(x, params, *, hidden_size, output_length):
    """Pure-JAX f32 reference matching torch.nn.LSTM + nn.Linear semantics."""
    B, T, F = x.shape
    H = hidden_size
    h = jnp.zeros((B, H), jnp.float32)
    c = jnp.zeros((B, H), jnp.float32)
    hs = []
    for t in range(T):
        gates = (x[:, t, :] @ params["w_ih"].T + params["b_ih"]
                 + h @ params["w_hh"].T + params["b_hh"])
        i, f, g, o = jnp.split(gates, 4, axis=-1)
        i = jax.nn.sigmoid(i)
        f = jax.nn.sigmoid(f)
        g = jnp.tanh(g)
        o = jax.nn.sigmoid(o)
        c = f * c + i * g
        h = o * jnp.tanh(c)
        hs.append(h)
    h_sel = hs[output_length]
    return h_sel @ params["w_lin"].T + params["b_lin"]


def init_params(key, *, hidden_size, output_length, n_features):
    """Deterministic init mirroring the PyTorch module's parameter shapes
    (nn.LSTM / nn.Linear use U(-1/sqrt(H), 1/sqrt(H)))."""
    H, OL, F = hidden_size, output_length, n_features
    k = 1.0 / jnp.sqrt(jnp.float32(H))
    keys = jax.random.split(key, 6)
    u = lambda kk, shape: jax.random.uniform(kk, shape, jnp.float32, -k, k)
    return {
        "w_ih": u(keys[0], (4 * H, F)),    # lstm.weight_ih_l0
        "w_hh": u(keys[1], (4 * H, H)),    # lstm.weight_hh_l0
        "b_ih": u(keys[2], (4 * H,)),      # lstm.bias_ih_l0
        "b_hh": u(keys[3], (4 * H,)),      # lstm.bias_hh_l0
        "w_lin": u(keys[4], (OL, H)),      # linear.weight
        "b_lin": u(keys[5], (OL,)),        # linear.bias
    }


if __name__ == "__main__":
    hidden_size = 32
    output_length = 4
    n_features = 1
    batch = 2
    seq_len = 8   # must be > output_length (forward indexes lstm_out[:, output_length])

    key = jax.random.PRNGKey(0)
    kx, kp = jax.random.split(key)
    x = jax.random.normal(kx, (batch, seq_len, n_features), jnp.float32)
    params = init_params(kp, hidden_size=hidden_size,
                         output_length=output_length, n_features=n_features)

    # One-time weight packing (off the hot path), then the Pallas forward.
    packed = prepare_params(params, hidden_size=hidden_size,
                            output_length=output_length)
    y = basic_lstm_simple_forward(x, packed)
    y = jax.block_until_ready(y)

    y_ref = reference_forward(x, params, hidden_size=hidden_size,
                              output_length=output_length)
    assert y.shape == (batch, output_length)
    # bf16 operands on the recurrent / head matmuls (f32 accumulate, f32 cell math):
    # tolerance loosened accordingly.
    assert jnp.allclose(y, y_ref, atol=2e-2, rtol=2e-2), "mismatch vs reference"

    print("KERNEL_OK")
</pallas_src>

<mosaic_0001>
module attributes {stable_mosaic.version = 11 : i64} {
  func.func @lstm_linear_kernel(%arg0: i32, %arg1: memref<8x5x1xf32, #tpu.memory_space<vmem>>, %arg2: memref<1x128xf32, #tpu.memory_space<vmem>>, %arg3: memref<32x128xbf16, #tpu.memory_space<vmem>>, %arg4: memref<1x128xf32, #tpu.memory_space<vmem>>, %arg5: memref<32x128xbf16, #tpu.memory_space<vmem>>, %arg6: memref<1x128xf32, #tpu.memory_space<vmem>>, %arg7: memref<8x128xf32, #tpu.memory_space<vmem>>, %arg8: memref<5x8x128xf32, #tpu.memory_space<vmem>>) attributes {dimension_semantics = [#tpu.dimension_semantics<parallel>], iteration_bounds = array<i64: 1>, scalar_prefetch = 0 : i64, scratch_operands = 1 : i64, tpu.core_type = #tpu.core_type<tc>, window_params = [{transform_indices = @transform_0, window_bounds = array<i64: 8, 5, 1>}, {pipeline_mode = #tpu.pipeline_mode<synchronous>, transform_indices = @transform_1, window_bounds = array<i64: 1, 128>}, {pipeline_mode = #tpu.pipeline_mode<synchronous>, transform_indices = @transform_2, window_bounds = array<i64: 32, 128>}, {pipeline_mode = #tpu.pipeline_mode<synchronous>, transform_indices = @transform_3, window_bounds = array<i64: 1, 128>}, {pipeline_mode = #tpu.pipeline_mode<synchronous>, transform_indices = @transform_4, window_bounds = array<i64: 32, 128>}, {pipeline_mode = #tpu.pipeline_mode<synchronous>, transform_indices = @transform_5, window_bounds = array<i64: 1, 128>}, {transform_indices = @transform_6, window_bounds = array<i64: 8, 128>}]} {
    %c0 = arith.constant 0 : index
    %c0_0 = arith.constant 0 : index
    %0 = vector.load %arg2[%c0, %c0_0] : memref<1x128xf32, #tpu.memory_space<vmem>>, vector<1x128xf32>
    %c0_1 = arith.constant 0 : index
    %c0_2 = arith.constant 0 : index
    %1 = vector.load %arg4[%c0_1, %c0_2] : memref<1x128xf32, #tpu.memory_space<vmem>>, vector<1x128xf32>
    %c0_3 = arith.constant 0 : index
    %c0_4 = arith.constant 0 : index
    %c0_5 = arith.constant 0 : index
    %2 = vector.load %arg1[%c0_3, %c0_4, %c0_5] : memref<8x5x1xf32, #tpu.memory_space<vmem>>, vector<8x1x1xf32>
    %3 = vector.shape_cast %2 : vector<8x1x1xf32> to vector<8x1xf32>
    %4 = vector.broadcast %3 : vector<8x1xf32> to vector<8x128xf32>
    %5 = vector.broadcast %0 : vector<1x128xf32> to vector<8x128xf32>
    %6 = arith.mulf %4, %5 : vector<8x128xf32>
    %7 = vector.broadcast %1 : vector<1x128xf32> to vector<8x128xf32>
    %8 = arith.addf %6, %7 : vector<8x128xf32>
    %c0_6 = arith.constant 0 : index
    %c0_7 = arith.constant 0 : index
    %c0_8 = arith.constant 0 : index
    %9 = vector.load %arg8[%c0_6, %c0_7, %c0_8] : memref<5x8x128xf32, #tpu.memory_space<vmem>>, vector<1x8x128xf32>
    %10 = vector.shape_cast %9 : vector<1x8x128xf32> to vector<8x128xf32>
    %11 = vector.shape_cast %8 : vector<8x128xf32> to vector<1x8x128xf32>
    tpu.vector_store %arg8[%c0_6, %c0_7, %c0_8], %11 {strides = array<i32>} : memref<5x8x128xf32, #tpu.memory_space<vmem>>, vector<1x8x128xf32>,
    %c0_9 = arith.constant 0 : index
    %c1 = arith.constant 1 : index
    %c0_10 = arith.constant 0 : index
    %12 = vector.load %arg1[%c0_9, %c1, %c0_10] : memref<8x5x1xf32, #tpu.memory_space<vmem>>, vector<8x1x1xf32>
    %13 = vector.shape_cast %12 : vector<8x1x1xf32> to vector<8x1xf32>
    %14 = vector.broadcast %13 : vector<8x1xf32> to vector<8x128xf32>
    %15 = vector.broadcast %0 : vector<1x128xf32> to vector<8x128xf32>
    %16 = arith.mulf %14, %15 : vector<8x128xf32>
    %17 = vector.broadcast %1 : vector<1x128xf32> to vector<8x128xf32>
    %18 = arith.addf %16, %17 : vector<8x128xf32>
    %c1_11 = arith.constant 1 : index
    %c0_12 = arith.constant 0 : index
    %c0_13 = arith.constant 0 : index
    %19 = vector.load %arg8[%c1_11, %c0_12, %c0_13] : memref<5x8x128xf32, #tpu.memory_space<vmem>>, vector<1x8x128xf32>
    %20 = vector.shape_cast %19 : vector<1x8x128xf32> to vector<8x128xf32>
    %21 = vector.shape_cast %18 : vector<8x128xf32> to vector<1x8x128xf32>
    tpu.vector_store %arg8[%c1_11, %c0_12, %c0_13], %21 {strides = array<i32>} : memref<5x8x128xf32, #tpu.memory_space<vmem>>, vector<1x8x128xf32>,
    %c0_14 = arith.constant 0 : index
    %c2 = arith.constant 2 : index
    %c0_15 = arith.constant 0 : index
    %22 = vector.load %arg1[%c0_14, %c2, %c0_15] : memref<8x5x1xf32, #tpu.memory_space<vmem>>, vector<8x1x1xf32>
    %23 = vector.shape_cast %22 : vector<8x1x1xf32> to vector<8x1xf32>
    %24 = vector.broadcast %23 : vector<8x1xf32> to vector<8x128xf32>
    %25 = vector.broadcast %0 : vector<1x128xf32> to vector<8x128xf32>
    %26 = arith.mulf %24, %25 : vector<8x128xf32>
    %27 = vector.broadcast %1 : vector<1x128xf32> to vector<8x128xf32>
    %28 = arith.addf %26, %27 : vector<8x128xf32>
    %c2_16 = arith.constant 2 : index
    %c0_17 = arith.constant 0 : index
    %c0_18 = arith.constant 0 : index
    %29 = vector.load %arg8[%c2_16, %c0_17, %c0_18] : memref<5x8x128xf32, #tpu.memory_space<vmem>>, vector<1x8x128xf32>
    %30 = vector.shape_cast %29 : vector<1x8x128xf32> to vector<8x128xf32>
    %31 = vector.shape_cast %28 : vector<8x128xf32> to vector<1x8x128xf32>
    tpu.vector_store %arg8[%c2_16, %c0_17, %c0_18], %31 {strides = array<i32>} : memref<5x8x128xf32, #tpu.memory_space<vmem>>, vector<1x8x128xf32>,
    %c0_19 = arith.constant 0 : index
    %c3 = arith.constant 3 : index
    %c0_20 = arith.constant 0 : index
    %32 = vector.load %arg1[%c0_19, %c3, %c0_20] : memref<8x5x1xf32, #tpu.memory_space<vmem>>, vector<8x1x1xf32>
    %33 = vector.shape_cast %32 : vector<8x1x1xf32> to vector<8x1xf32>
    %34 = vector.broadcast %33 : vector<8x1xf32> to vector<8x128xf32>
    %35 = vector.broadcast %0 : vector<1x128xf32> to vector<8x128xf32>
    %36 = arith.mulf %34, %35 : vector<8x128xf32>
    %37 = vector.broadcast %1 : vector<1x128xf32> to vector<8x128xf32>
    %38 = arith.addf %36, %37 : vector<8x128xf32>
    %c3_21 = arith.constant 3 : index
    %c0_22 = arith.constant 0 : index
    %c0_23 = arith.constant 0 : index
    %39 = vector.load %arg8[%c3_21, %c0_22, %c0_23] : memref<5x8x128xf32, #tpu.memory_space<vmem>>, vector<1x8x128xf32>
    %40 = vector.shape_cast %39 : vector<1x8x128xf32> to vector<8x128xf32>
    %41 = vector.shape_cast %38 : vector<8x128xf32> to vector<1x8x128xf32>
    tpu.vector_store %arg8[%c3_21, %c0_22, %c0_23], %41 {strides = array<i32>} : memref<5x8x128xf32, #tpu.memory_space<vmem>>, vector<1x8x128xf32>,
    %c0_24 = arith.constant 0 : index
    %c4 = arith.constant 4 : index
    %c0_25 = arith.constant 0 : index
    %42 = vector.load %arg1[%c0_24, %c4, %c0_25] : memref<8x5x1xf32, #tpu.memory_space<vmem>>, vector<8x1x1xf32>
    %43 = vector.shape_cast %42 : vector<8x1x1xf32> to vector<8x1xf32>
    %44 = vector.broadcast %43 : vector<8x1xf32> to vector<8x128xf32>
    %45 = vector.broadcast %0 : vector<1x128xf32> to vector<8x128xf32>
    %46 = arith.mulf %44, %45 : vector<8x128xf32>
    %47 = vector.broadcast %1 : vector<1x128xf32> to vector<8x128xf32>
    %48 = arith.addf %46, %47 : vector<8x128xf32>
    %c4_26 = arith.constant 4 : index
    %c0_27 = arith.constant 0 : index
    %c0_28 = arith.constant 0 : index
    %49 = vector.load %arg8[%c4_26, %c0_27, %c0_28] : memref<5x8x128xf32, #tpu.memory_space<vmem>>, vector<1x8x128xf32>
    %50 = vector.shape_cast %49 : vector<1x8x128xf32> to vector<8x128xf32>
    %51 = vector.shape_cast %48 : vector<8x128xf32> to vector<1x8x128xf32>
    tpu.vector_store %arg8[%c4_26, %c0_27, %c0_28], %51 {strides = array<i32>} : memref<5x8x128xf32, #tpu.memory_space<vmem>>, vector<1x8x128xf32>,
    %52 = tpu.iota {dimensions = array<i32: 1>} : vector<8x128xi32>
    %c64_i32 = arith.constant 64 : i32
    %53 = vector.broadcast %c64_i32 : i32 to vector<8x128xi32>
    %54 = arith.cmpi sge, %52, %53 : vector<8x128xi32>
    %c96_i32 = arith.constant 96 : i32
    %55 = vector.broadcast %c96_i32 : i32 to vector<8x128xi32>
    %56 = arith.cmpi slt, %52, %55 : vector<8x128xi32>
    %57 = arith.andi %54, %56 : vector<8x128xi1>
    %cst = arith.constant 0.000000e+00 : f32
    %58 = vector.broadcast %cst : f32 to vector<8x32xf32>
    %cst_29 = arith.constant 0.000000e+00 : f32
    %59 = vector.broadcast %cst_29 : f32 to vector<8x32xf32>
    %c0_i32 = arith.constant 0 : i32
    %60 = arith.index_cast %c0_i32 : i32 to index
    %c0_30 = arith.constant 0 : index
    %c0_31 = arith.constant 0 : index
    %61 = vector.load %arg8[%60, %c0_30, %c0_31] : memref<5x8x128xf32, #tpu.memory_space<vmem>>, vector<1x8x128xf32>
    %62 = vector.shape_cast %61 : vector<1x8x128xf32> to vector<8x128xf32>
    %63 = arith.truncf %58 : vector<8x32xf32> to vector<8x32xbf16>
    %c0_32 = arith.constant 0 : index
    %c0_33 = arith.constant 0 : index
    %64 = vector.load %arg3[%c0_32, %c0_33] : memref<32x128xbf16, #tpu.memory_space<vmem>>, vector<32x128xbf16>
    %cst_34 = arith.constant dense<0.000000e+00> : vector<8x128xf32>
    %65 = tpu.matmul %63, %64, %cst_34 {dimension_numbers = #tpu.dot_dimension_numbers<[1], [0], [0], [1], [0, 0, 1, 1], [], []>} : vector<8x32xbf16>, vector<32x128xbf16>, vector<8x128xf32> -> vector<8x128xf32>
    %66 = arith.addf %62, %65 : vector<8x128xf32>
    %67 = math.tanh %66 : vector<8x128xf32>
    %68 = arith.negf %66 : vector<8x128xf32>
    %69 = math.exp %68 : vector<8x128xf32>
    %cst_35 = arith.constant 1.000000e+00 : f32
    %70 = vector.broadcast %cst_35 : f32 to vector<8x128xf32>
    %71 = arith.addf %70, %69 : vector<8x128xf32>
    %72 = arith.divf %70, %71 : vector<8x128xf32>
    %73 = arith.select %57, %67, %72 : vector<8x128xi1>, vector<8x128xf32>
    %74 = vector.extract_strided_slice %73 {offsets = [0, 0], sizes = [8, 32], strides = [1, 1]} : vector<8x128xf32> to vector<8x32xf32>
    %75 = vector.extract_strided_slice %73 {offsets = [0, 32], sizes = [8, 32], strides = [1, 1]} : vector<8x128xf32> to vector<8x32xf32>
    %76 = vector.extract_strided_slice %73 {offsets = [0, 64], sizes = [8, 32], strides = [1, 1]} : vector<8x128xf32> to vector<8x32xf32>
    %77 = vector.extract_strided_slice %73 {offsets = [0, 96], sizes = [8, 32], strides = [1, 1]} : vector<8x128xf32> to vector<8x32xf32>
    %78 = arith.mulf %75, %59 : vector<8x32xf32>
    %79 = arith.mulf %74, %76 : vector<8x32xf32>
    %80 = arith.addf %78, %79 : vector<8x32xf32>
    %81 = math.tanh %80 : vector<8x32xf32>
    %82 = arith.mulf %77, %81 : vector<8x32xf32>
    %c1_i32 = arith.constant 1 : i32
    %83 = arith.index_cast %c1_i32 : i32 to index
    %c0_36 = arith.constant 0 : index
    %c0_37 = arith.constant 0 : index
    %84 = vector.load %arg8[%83, %c0_36, %c0_37] : memref<5x8x128xf32, #tpu.memory_space<vmem>>, vector<1x8x128xf32>
    %85 = vector.shape_cast %84 : vector<1x8x128xf32> to vector<8x128xf32>
    %86 = arith.truncf %82 : vector<8x32xf32> to vector<8x32xbf16>
    %c0_38 = arith.constant 0 : index
    %c0_39 = arith.constant 0 : index
    %87 = vector.load %arg3[%c0_38, %c0_39] : memref<32x128xbf16, #tpu.memory_space<vmem>>, vector<32x128xbf16>
    %cst_40 = arith.constant dense<0.000000e+00> : vector<8x128xf32>
    %88 = tpu.matmul %86, %87, %cst_40 {dimension_numbers = #tpu.dot_dimension_numbers<[1], [0], [0], [1], [0, 0, 1, 1], [], []>} : vector<8x32xbf16>, vector<32x128xbf16>, vector<8x128xf32> -> vector<8x128xf32>
    %89 = arith.addf %85, %88 : vector<8x128xf32>
    %90 = math.tanh %89 : vector<8x128xf32>
    %91 = arith.negf %89 : vector<8x128xf32>
    %92 = math.exp %91 : vector<8x128xf32>
    %cst_41 = arith.constant 1.000000e+00 : f32
    %93 = vector.broadcast %cst_41 : f32 to vector<8x128xf32>
    %94 = arith.addf %93, %92 : vector<8x128xf32>
    %95 = arith.divf %93, %94 : vector<8x128xf32>
    %96 = arith.select %57, %90, %95 : vector<8x128xi1>, vector<8x128xf32>
    %97 = vector.extract_strided_slice %96 {offsets = [0, 0], sizes = [8, 32], strides = [1, 1]} : vector<8x128xf32> to vector<8x32xf32>
    %98 = vector.extract_strided_slice %96 {offsets = [0, 32], sizes = [8, 32], strides = [1, 1]} : vector<8x128xf32> to vector<8x32xf32>
    %99 = vector.extract_strided_slice %96 {offsets = [0, 64], sizes = [8, 32], strides = [1, 1]} : vector<8x128xf32> to vector<8x32xf32>
    %100 = vector.extract_strided_slice %96 {offsets = [0, 96], sizes = [8, 32], strides = [1, 1]} : vector<8x128xf32> to vector<8x32xf32>
    %101 = arith.mulf %98, %80 : vector<8x32xf32>
    %102 = arith.mulf %97, %99 : vector<8x32xf32>
    %103 = arith.addf %101, %102 : vector<8x32xf32>
    %104 = math.tanh %103 : vector<8x32xf32>
    %105 = arith.mulf %100, %104 : vector<8x32xf32>
    %c2_i32 = arith.constant 2 : i32
    %106 = arith.index_cast %c2_i32 : i32 to index
    %c0_42 = arith.constant 0 : index
    %c0_43 = arith.constant 0 : index
    %107 = vector.load %arg8[%106, %c0_42, %c0_43] : memref<5x8x128xf32, #tpu.memory_space<vmem>>, vector<1x8x128xf32>
    %108 = vector.shape_cast %107 : vector<1x8x128xf32> to vector<8x128xf32>
    %109 = arith.truncf %105 : vector<8x32xf32> to vector<8x32xbf16>
    %c0_44 = arith.constant 0 : index
    %c0_45 = arith.constant 0 : index
    %110 = vector.load %arg3[%c0_44, %c0_45] : memref<32x128xbf16, #tpu.memory_space<vmem>>, vector<32x128xbf16>
    %cst_46 = arith.constant dense<0.000000e+00> : vector<8x128xf32>
    %111 = tpu.matmul %109, %110, %cst_46 {dimension_numbers = #tpu.dot_dimension_numbers<[1], [0], [0], [1], [0, 0, 1, 1], [], []>} : vector<8x32xbf16>, vector<32x128xbf16>, vector<8x128xf32> -> vector<8x128xf32>
    %112 = arith.addf %108, %111 : vector<8x128xf32>
    %113 = math.tanh %112 : vector<8x128xf32>
    %114 = arith.negf %112 : vector<8x128xf32>
    %115 = math.exp %114 : vector<8x128xf32>
    %cst_47 = arith.constant 1.000000e+00 : f32
    %116 = vector.broadcast %cst_47 : f32 to vector<8x128xf32>
    %117 = arith.addf %116, %115 : vector<8x128xf32>
    %118 = arith.divf %116, %117 : vector<8x128xf32>
    %119 = arith.select %57, %113, %118 : vector<8x128xi1>, vector<8x128xf32>
    %120 = vector.extract_strided_slice %119 {offsets = [0, 0], sizes = [8, 32], strides = [1, 1]} : vector<8x128xf32> to vector<8x32xf32>
    %121 = vector.extract_strided_slice %119 {offsets = [0, 32], sizes = [8, 32], strides = [1, 1]} : vector<8x128xf32> to vector<8x32xf32>
    %122 = vector.extract_strided_slice %119 {offsets = [0, 64], sizes = [8, 32], strides = [1, 1]} : vector<8x128xf32> to vector<8x32xf32>
    %123 = vector.extract_strided_slice %119 {offsets = [0, 96], sizes = [8, 32], strides = [1, 1]} : vector<8x128xf32> to vector<8x32xf32>
    %124 = arith.mulf %121, %103 : vector<8x32xf32>
    %125 = arith.mulf %120, %122 : vector<8x32xf32>
    %126 = arith.addf %124, %125 : vector<8x32xf32>
    %127 = math.tanh %126 : vector<8x32xf32>
    %128 = arith.mulf %123, %127 : vector<8x32xf32>
    %c3_i32 = arith.constant 3 : i32
    %129 = arith.index_cast %c3_i32 : i32 to index
    %c0_48 = arith.constant 0 : index
    %c0_49 = arith.constant 0 : index
    %130 = vector.load %arg8[%129, %c0_48, %c0_49] : memref<5x8x128xf32, #tpu.memory_space<vmem>>, vector<1x8x128xf32>
    %131 = vector.shape_cast %130 : vector<1x8x128xf32> to vector<8x128xf32>
    %132 = arith.truncf %128 : vector<8x32xf32> to vector<8x32xbf16>
    %c0_50 = arith.constant 0 : index
    %c0_51 = arith.constant 0 : index
    %133 = vector.load %arg3[%c0_50, %c0_51] : memref<32x128xbf16, #tpu.memory_space<vmem>>, vector<32x128xbf16>
    %cst_52 = arith.constant dense<0.000000e+00> : vector<8x128xf32>
    %134 = tpu.matmul %132, %133, %cst_52 {dimension_numbers = #tpu.dot_dimension_numbers<[1], [0], [0], [1], [0, 0, 1, 1], [], []>} : vector<8x32xbf16>, vector<32x128xbf16>, vector<8x128xf32> -> vector<8x128xf32>
    %135 = arith.addf %131, %134 : vector<8x128xf32>
    %136 = math.tanh %135 : vector<8x128xf32>
    %137 = arith.negf %135 : vector<8x128xf32>
    %138 = math.exp %137 : vector<8x128xf32>
    %cst_53 = arith.constant 1.000000e+00 : f32
    %139 = vector.broadcast %cst_53 : f32 to vector<8x128xf32>
    %140 = arith.addf %139, %138 : vector<8x128xf32>
    %141 = arith.divf %139, %140 : vector<8x128xf32>
    %142 = arith.select %57, %136, %141 : vector<8x128xi1>, vector<8x128xf32>
    %143 = vector.extract_strided_slice %142 {offsets = [0, 0], sizes = [8, 32], strides = [1, 1]} : vector<8x128xf32> to vector<8x32xf32>
    %144 = vector.extract_strided_slice %142 {offsets = [0, 32], sizes = [8, 32], strides = [1, 1]} : vector<8x128xf32> to vector<8x32xf32>
    %145 = vector.extract_strided_slice %142 {offsets = [0, 64], sizes = [8, 32], strides = [1, 1]} : vector<8x128xf32> to vector<8x32xf32>
    %146 = vector.extract_strided_slice %142 {offsets = [0, 96], sizes = [8, 32], strides = [1, 1]} : vector<8x128xf32> to vector<8x32xf32>
    %147 = arith.mulf %144, %126 : vector<8x32xf32>
    %148 = arith.mulf %143, %145 : vector<8x32xf32>
    %149 = arith.addf %147, %148 : vector<8x32xf32>
    %150 = math.tanh %149 : vector<8x32xf32>
    %151 = arith.mulf %146, %150 : vector<8x32xf32>
    %c4_i32 = arith.constant 4 : i32
    %152 = arith.index_cast %c4_i32 : i32 to index
    %c0_54 = arith.constant 0 : index
    %c0_55 = arith.constant 0 : index
    %153 = vector.load %arg8[%152, %c0_54, %c0_55] : memref<5x8x128xf32, #tpu.memory_space<vmem>>, vector<1x8x128xf32>
    %154 = vector.shape_cast %153 : vector<1x8x128xf32> to vector<8x128xf32>
    %155 = arith.truncf %151 : vector<8x32xf32> to vector<8x32xbf16>
    %c0_56 = arith.constant 0 : index
    %c0_57 = arith.constant 0 : index
    %156 = vector.load %arg3[%c0_56, %c0_57] : memref<32x128xbf16, #tpu.memory_space<vmem>>, vector<32x128xbf16>
    %cst_58 = arith.constant dense<0.000000e+00> : vector<8x128xf32>
    %157 = tpu.matmul %155, %156, %cst_58 {dimension_numbers = #tpu.dot_dimension_numbers<[1], [0], [0], [1], [0, 0, 1, 1], [], []>} : vector<8x32xbf16>, vector<32x128xbf16>, vector<8x128xf32> -> vector<8x128xf32>
    %158 = arith.addf %154, %157 : vector<8x128xf32>
    %159 = math.tanh %158 : vector<8x128xf32>
    %160 = arith.negf %158 : vector<8x128xf32>
    %161 = math.exp %160 : vector<8x128xf32>
    %cst_59 = arith.constant 1.000000e+00 : f32
    %162 = vector.broadcast %cst_59 : f32 to vector<8x128xf32>
    %163 = arith.addf %162, %161 : vector<8x128xf32>
    %164 = arith.divf %162, %163 : vector<8x128xf32>
    %165 = arith.select %57, %159, %164 : vector<8x128xi1>, vector<8x128xf32>
    %166 = vector.extract_strided_slice %165 {offsets = [0, 0], sizes = [8, 32], strides = [1, 1]} : vector<8x128xf32> to vector<8x32xf32>
    %167 = vector.extract_strided_slice %165 {offsets = [0, 32], sizes = [8, 32], strides = [1, 1]} : vector<8x128xf32> to vector<8x32xf32>
    %168 = vector.extract_strided_slice %165 {offsets = [0, 64], sizes = [8, 32], strides = [1, 1]} : vector<8x128xf32> to vector<8x32xf32>
    %169 = vector.extract_strided_slice %165 {offsets = [0, 96], sizes = [8, 32], strides = [1, 1]} : vector<8x128xf32> to vector<8x32xf32>
    %170 = arith.mulf %167, %149 : vector<8x32xf32>
    %171 = arith.mulf %166, %168 : vector<8x32xf32>
    %172 = arith.addf %170, %171 : vector<8x32xf32>
    %173 = math.tanh %172 : vector<8x32xf32>
    %174 = arith.mulf %169, %173 : vector<8x32xf32>
    %c5_i32 = arith.constant 5 : i32
    %175 = arith.truncf %174 : vector<8x32xf32> to vector<8x32xbf16>
    %c0_60 = arith.constant 0 : index
    %c0_61 = arith.constant 0 : index
    %176 = vector.load %arg5[%c0_60, %c0_61] : memref<32x128xbf16, #tpu.memory_space<vmem>>, vector<32x128xbf16>
    %cst_62 = arith.constant dense<0.000000e+00> : vector<8x128xf32>
    %177 = tpu.matmul %175, %176, %cst_62 {dimension_numbers = #tpu.dot_dimension_numbers<[1], [0], [0], [1], [0, 0, 1, 1], [], []>} : vector<8x32xbf16>, vector<32x128xbf16>, vector<8x128xf32> -> vector<8x128xf32>
    %c0_63 = arith.constant 0 : index
    %c0_64 = arith.constant 0 : index
    %178 = vector.load %arg6[%c0_63, %c0_64] : memref<1x128xf32, #tpu.memory_space<vmem>>, vector<1x128xf32>
    %179 = vector.broadcast %178 : vector<1x128xf32> to vector<8x128xf32>
    %180 = arith.addf %177, %179 : vector<8x128xf32>
    %c0_65 = arith.constant 0 : index
    %c0_66 = arith.constant 0 : index
    %181 = vector.load %arg7[%c0_65, %c0_66] : memref<8x128xf32, #tpu.memory_space<vmem>>, vector<8x128xf32>
    tpu.vector_store %arg7[%c0_65, %c0_66], %180 {strides = array<i32>} : memref<8x128xf32, #tpu.memory_space<vmem>>, vector<8x128xf32>,
    return
  }
  func.func @transform_0(%arg0: i32) -> (i32, i32, i32) {
    %c0_i32 = arith.constant 0 : i32
    %c0_i32_0 = arith.constant 0 : i32
    %c0_i32_1 = arith.constant 0 : i32
    return %arg0, %c0_i32, %c0_i32_0 : i32, i32, i32
  }
  func.func @transform_1(%arg0: i32) -> (i32, i32) {
    %c0_i32 = arith.constant 0 : i32
    %c0_i32_0 = arith.constant 0 : i32
    %c0_i32_1 = arith.constant 0 : i32
    return %c0_i32, %c0_i32_0 : i32, i32
  }
  func.func @transform_2(%arg0: i32) -> (i32, i32) {
    %c0_i32 = arith.constant 0 : i32
    %c0_i32_0 = arith.constant 0 : i32
    %c0_i32_1 = arith.constant 0 : i32
    return %c0_i32, %c0_i32_0 : i32, i32
  }
  func.func @transform_3(%arg0: i32) -> (i32, i32) {
    %c0_i32 = arith.constant 0 : i32
    %c0_i32_0 = arith.constant 0 : i32
    %c0_i32_1 = arith.constant 0 : i32
    return %c0_i32, %c0_i32_0 : i32, i32
  }
  func.func @transform_4(%arg0: i32) -> (i32, i32) {
    %c0_i32 = arith.constant 0 : i32
    %c0_i32_0 = arith.constant 0 : i32
    %c0_i32_1 = arith.constant 0 : i32
    return %c0_i32, %c0_i32_0 : i32, i32
  }
  func.func @transform_5(%arg0: i32) -> (i32, i32) {
    %c0_i32 = arith.constant 0 : i32
    %c0_i32_0 = arith.constant 0 : i32
    %c0_i32_1 = arith.constant 0 : i32
    return %c0_i32, %c0_i32_0 : i32, i32
  }
  func.func @transform_6(%arg0: i32) -> (i32, i32) {
    %c0_i32 = arith.constant 0 : i32
    %c0_i32_0 = arith.constant 0 : i32
    return %arg0, %c0_i32 : i32, i32
  }
}

</mosaic_0001>

<bundles_post_ra>
// kernel: tpu_custom_call.1
= control target key start
LH: loop header
LB: loop body
LE: loop exit
PB: predicated region body
PF: predicated region fallthrough
CT: control target
= control target key end

     0   :  { %v1122_v1 = vmov 0.0   ;;  %vm1123_vm0 = vmmov 0   ;;  %v1124_v5 = vmov 0   ;;  %s1528_s0 = inlined_call_operand.vmem [shape: f32[8,5,1], index: 0, kind: input, shape index: {}]   ;;  %s1529_s1 = inlined_call_operand.vmem [shape: f32[1,128], index: 1, kind: input, shape index: {}]   ;;  %s1530_s2 = inlined_call_operand.vmem [shape: bf16[32,128], index: 2, kind: input, shape index: {}]   ;;  %s1531_s3 = inlined_call_operand.vmem [shape: f32[1,128], index: 3, kind: input, shape index: {}]   ;;  %s1532_s4 = inlined_call_operand.vmem [shape: bf16[32,128], index: 4, kind: input, shape index: {}]   ;;  %s1533_s5 = inlined_call_operand.vmem [shape: f32[1,128], index: 5, kind: input, shape index: {}]   ;;  %s1534_s6 = inlined_call_operand.hbm [shape: f32[8,128], index: 6, kind: output, shape index: {}]  }
   0x1   :  { %v1166_v0 = vld [vmem:[%s1530_s2] sm:$0xff]   ;;  %998 = vmatprep.subr.bf16.mxu0 %v1122_v1  ;;  %1006 = vmatprep.subr.bf16.mxu1 %v1122_v1  ;;  %v1174_v2 = vld [vmem:[%s1530_s2 + $0x8] sm:$0xff]   ;;  %v29_v6 = vld [vmem:[%s1528_s0 + $0x10] sm:$0x1] }
   0x2   :  { %999 = vmatpush3.bf16.msra.mxu0 %v1166_v0  ;;  %1002 = vmatprep.mubr.msk.bf16.mxu0 %vm1123_vm0, %v1122_v1  ;;  %v28_v3 = vld [vmem:[%s1528_s0 + $0x8] sm:$0x1]  ;;  %v27_v4 = vld [vmem:[%s1528_s0] sm:$0x1]  ;;  %v30_v7 = vld [vmem:[%s1528_s0 + $0x18] sm:$0x1] }
   0x3   :  { %1000 = vmatprep.subr.bf16.mxu0 %v1122_v1  ;;  %1052 = vset.pattern.permute.xlu0 %v1124_v5 }
   0x4   :  { %1053 = vset.pattern.permute.xlu1 %v1124_v5  ;;  %42 = vperm.xlu0 %1052, %v28_v3  }
   0x5   :  { %37 = vperm.xlu1 %1053, %v27_v4   ;;  %1007 = vmatpush3.bf16.msra.mxu1 %v1166_v0 }
   0x6   :  { %1001 = vmatpush3.bf16.msra.mxu0 %v1174_v2  ;;  %1008 = vmatprep.subr.bf16.mxu1 %v1122_v1 }
   0x7   :  { %1010 = vmatprep.mubr.msk.bf16.mxu1 %vm1123_vm0, %v1122_v1  ;;  %1014 = vmatprep.subr.bf16.mxu0 %v1122_v1 }
   0x8   :  { %11 = vsyncpa [#allocation4], 0  ;;  %47 = vperm.xlu0 %1052, %v29_v6   ;;  %v31_v8 = vld [vmem:[%s1528_s0 + $0x20] sm:$0x1]  ;;  %v32_v9 = vld [vmem:[%s1528_s0 + $0x28] sm:$0x1]  ;;  %v490_v59 = vlaneseq }
   0x9   :  { %1003 = vmatmul.mubr.bf16.vlgmr.msra.gmra.mrb[0].mxu0 %v1124_v5  ;;  %52 = vperm.xlu1 %1053, %v30_v7   ;;  %v33_v10 = vld [vmem:[%s1528_s0 + $0x30] sm:$0x1]  ;;  %v34_v11 = vld [vmem:[%s1528_s0 + $0x38] sm:$0x1]  ;;  %v1220_v13 = vld [vmem:[%s1529_s1] ss:$0 sm:$0xff] }
   0xa   :  { %1009 = vmatpush3.bf16.msra.mxu1 %v1174_v2  ;;  %1015 = vmatpush3.bf16.msra.mxu0 %v1166_v0  ;;  %v1226_v17 = vld [vmem:[%s1531_s3] ss:$0 sm:$0xff]  ;;  %vm112_vm1 = vcmask 1041409   ;;  %vm115_vm2 = vcmask 1042434   ;;  %vm118_vm3 = vcmask 1043459   ;;  %vm121_vm4 = vcmask 1044484  }
   0xb   :  { %1016 = vmatprep.subr.bf16.mxu0 %v1122_v1  ;;  %1018 = vmatprep.mubr.msk.bf16.mxu0 %vm1123_vm0, %v1122_v1  ;;  %vm124_vm5 = vcmask 1045509   ;;  %vm127_vm6 = vcmask 1046534   ;;  %vm130_vm7 = vcmask 1047559   ;;  %v491_v61 = vand.u32 127, %v490_v59  ;;  %s1125_s1 = smov 64   ;;  %s1126_s3 = smov 32  }
   0xc   :  { %57 = vperm.xlu0 %1052, %v31_v8   ;;  %1022 = vmatprep.subr.bf16.mxu1 %v1122_v1  ;;  %vm512_vm11 = vcmask 261120   ;;  %v1057_v62 = vld [vmem:[%s1532_s4 + $0x8] sm:$0xff]   ;;  %s1127_s14 = smov [#allocation3]  }
   0xd   :  { %62 = vperm.xlu1 %1053, %v32_v9   ;;  %vm492_vm8 = vcmp.ge.s32.totalorder %v491_v61, 64  ;;  %vm493_vm9 = vcmp.lt.s32.totalorder %v491_v61, 96 }
   0xe   :  { %1017 = vmatpush3.bf16.msra.mxu0 %v1174_v2  ;;  %vm1250_vm10 = vmand %vm492_vm8, %vm493_vm9 }
   0xf   :  { %1030 = vmatprep.subr.bf16.mxu0 %v1122_v1 }
  0x10   :  { %67 = vperm.xlu0 %1052, %v33_v10  }
  0x11   :  { %72 = vperm.xlu1 %1053, %v34_v11   ;;  %v135_v11 = vld [vmem:[%s1528_s0 + $0x9] sm:$0x1] }
  0x83   :  { %v43_v12 = vpop.permute.xlu0 %42 }
  0x84   :  { %v38_v14 = vpop.permute.xlu1 %37  ;;  %v82_v15 = vmul.f32 %v1220_v13, %v43_v12  ;;  %v134_v12 = vld [vmem:[%s1528_s0 + $0x1] sm:$0x1] }
  0x85   :  { %v81_v21 = vmul.f32 %v1220_v13, %v38_v14  ;;  %v138_v14 = vld [vmem:[%s1528_s0 + $0x21] sm:$0x1] }
  0x86   :  { %v96_v20 = vadd.f32 %v1226_v17, %v82_v15  ;;  %v140_v15 = vld [vmem:[%s1528_s0 + $0x31] sm:$0x1] }
  0x87   :  { %v48_v16 = vpop.permute.xlu0 %47  ;;  %v95_v26 = vadd.f32 %v1226_v17, %v81_v21  ;;  %v137_v21 = vld [vmem:[%s1528_s0 + $0x19] sm:$0x1] }
  0x88   :  { %v83_v18 = vmul.f32 %v1220_v13, %v48_v16  ;;  %v53_v19 = vpop.permute.xlu1 %52  ;;  %v111_v25 = vrot.slane %v96_v20, 7  ;;  %v136_v20 = vld [vmem:[%s1528_s0 + $0x11] sm:$0x1] }
  0x89   :  { %v84_v22 = vmul.f32 %v1220_v13, %v53_v19 }
  0x8a   :  { %v97_v24 = vadd.f32 %v1226_v17, %v83_v18  ;;  %v113_v31 = vsel %vm112_vm1, %v111_v25, %v95_v26 }
  0x8b   :  { %v58_v23 = vpop.permute.xlu0 %57  ;;  %v98_v29 = vadd.f32 %v1226_v17, %v84_v22  ;;  %v139_v22 = vld [vmem:[%s1528_s0 + $0x29] sm:$0x1] }
  0x8c   :  { %v85_v27 = vmul.f32 %v1220_v13, %v58_v23  ;;  %v63_v28 = vpop.permute.xlu1 %62  ;;  %v114_v30 = vrot.slane %v97_v24, 6  ;;  %v141_v23 = vld [vmem:[%s1528_s0 + $0x39] sm:$0x1] }
  0x8d   :  { %v86_v32 = vmul.f32 %v1220_v13, %v63_v28  ;;  %v117_v35 = vrot.slane %v98_v29, 5 }
  0x8e   :  { %v99_v34 = vadd.f32 %v1226_v17, %v85_v27  ;;  %v116_v36 = vsel %vm115_vm2, %v114_v30, %v113_v31 }
  0x8f   :  { %v68_v33 = vpop.permute.xlu0 %67  ;;  %v100_v39 = vadd.f32 %v1226_v17, %v86_v32  ;;  %v119_v41 = vsel %vm118_vm3, %v117_v35, %v116_v36 }
  0x90   :  { %v87_v37 = vmul.f32 %v1220_v13, %v68_v33  ;;  %v73_v38 = vpop.permute.xlu1 %72  ;;  %v120_v40 = vrot.slane %v99_v34, 4 }
  0x91   :  { %v88_v42 = vmul.f32 %v1220_v13, %v73_v38  ;;  %v123_v44 = vrot.slane %v100_v39, 3 }
  0x92   :  { %v101_v43 = vadd.f32 %v1226_v17, %v87_v37  ;;  %v122_v45 = vsel %vm121_vm4, %v120_v40, %v119_v41 }
  0x93   :  { %v102_v46 = vadd.f32 %v1226_v17, %v88_v42  ;;  %v125_v48 = vsel %vm124_vm5, %v123_v44, %v122_v45 }
  0x94   :  { %v126_v47 = vrot.slane %v101_v43, 2 }
  0x95   :  { %v129_v49 = vrot.slane %v102_v46, 1 }
  0x96   :  { %v128_v50 = vsel %vm127_vm6, %v126_v47, %v125_v48 }
  0x97   :  { %v131_v51 = vsel %vm130_vm7, %v129_v49, %v128_v50 }
  0xdc   :  { %v550_v52 = vpop.f32.mrb[0].mxu0 }
  0xdd   :  { %v556_v53 = vadd.f32 %v550_v52, %v131_v51  ;;  %v1004_v54 = vpop.f32.mrb[1].mxu0 }
  0xde   :  { %v553_v55 = vpop.f32.mrb[2].mxu0 }
  0xdf   :  { %v967_v56 = vmul.f32 -1.442695, %v556_v53  ;;  %v1005_v57 = vpop.f32.mrb[3].mxu0 }
  0xe1   :  { %1058 = vpow2.f32 %v967_v56 }
  0xe2   :  { %1060 = vtanh.f32 %v556_v53 }
  0xeb   :  { %v1059_v58 = vpop.eup %1058 }
  0xec   :  { %v561_v60 = vadd.f32 1.0, %v1059_v58  ;;  %v1061_v63 = vpop.eup %1060 }
  0xee   :  { %1062 = vrcp.f32 %v561_v60 }
  0xf8   :  { %v1063_v3 = vpop.eup %1062 }
  0xf9   :  { %v564_v4 = vsel %vm1250_vm10, %v1061_v63, %v1063_v3 }
  0xfa   :  { %567 = vrot.lane.b32.xlu0 %v564_v4, %s1125_s1  ;;  %v565_v7 = vmul.f32 0.0, %v564_v4 }
 0x16c   :  { %v568_v5 = vpop.permute.xlu0 %567 }
 0x16d   :  { %v570_v6 = vmul.f32 %v568_v5, %v564_v4 }
 0x16f   :  { %572 = vrot.lane.b32.xlu1 %v570_v6, %s1126_s3 }
 0x1e1   :  { %v573_v8 = vpop.permute.xlu1 %572 }
 0x1e2   :  { %v1258_v9 = vadd.f32 %v573_v8, %v565_v7 }
 0x1e4   :  { %1064 = vtanh.f32 %v1258_v9 }
 0x1ee   :  { %v1065_v10 = vpop.eup %1064 }
 0x1ef   :  { %578 = vrot.lane.b32.xlu0 %v1065_v10, %s1125_s1 }
 0x1f3   :  { %149 = vperm.xlu0 %1052, %v135_v11  }
 0x1f7   :  { %144 = vperm.xlu0 %1052, %v134_v12  }
 0x1fb   :  { %164 = vperm.xlu0 %1052, %v138_v14  }
 0x1ff   :  { %174 = vperm.xlu0 %1052, %v140_v15  }
 0x261   :  { %v579_v16 = vpop.permute.xlu0 %578 }
 0x262   :  { %v581_v18 = vmul.f32 %v579_v16, %v564_v4 }
 0x264   :  { %v583_v19 = vpack.c.bf16 %v581_v18, %v581_v18 }
 0x266   :  { %585 = vrot.lane.b32.xlu1 %v583_v19, %s1126_s3 }
 0x26a   :  { %154 = vperm.xlu1 %1053, %v136_v20  }
 0x26e   :  { %159 = vperm.xlu1 %1053, %v137_v21  }
 0x272   :  { %169 = vperm.xlu1 %1053, %v139_v22   ;;  %v150_v26 = vpop.permute.xlu0 %149 }
 0x273   :  { %v183_v31 = vmul.f32 %v1220_v13, %v150_v26 }
 0x275   :  { %v191_v36 = vadd.f32 %v1226_v17, %v183_v31  ;;  %v228_v31 = vld [vmem:[%s1528_s0 + $0x2a] sm:$0x1] }
 0x276   :  { %179 = vperm.xlu1 %1053, %v141_v23   ;;  %v145_v28 = vpop.permute.xlu0 %144  ;;  %v224_v23 = vld [vmem:[%s1528_s0 + $0xa] sm:$0x1] }
 0x277   :  { %v182_v34 = vmul.f32 %v1220_v13, %v145_v28  ;;  %v206_v44 = vrot.slane %v191_v36, 7 }
 0x279   :  { %v190_v41 = vadd.f32 %v1226_v17, %v182_v34 }
 0x27a   :  { %v165_v32 = vpop.permute.xlu0 %164 }
 0x27b   :  { %v186_v39 = vmul.f32 %v1220_v13, %v165_v32  ;;  %v207_v50 = vsel %vm112_vm1, %v206_v44, %v190_v41  ;;  %v230_v32 = vld [vmem:[%s1528_s0 + $0x3a] sm:$0x1] }
 0x27d   :  { %v194_v48 = vadd.f32 %v1226_v17, %v186_v39 }
 0x27e   :  { %v175_v42 = vpop.permute.xlu0 %174 }
 0x27f   :  { %v188_v49 = vmul.f32 %v1220_v13, %v175_v42  ;;  %v212_v55 = vrot.slane %v194_v48, 4 }
 0x281   :  { %v196_v56 = vadd.f32 %v1226_v17, %v188_v49 }
 0x283   :  { %v216_v60 = vrot.slane %v196_v56, 2 }
 0x2d8   :  { %v586_v24 = vpop.permute.xlu1 %585 }
 0x2d9   :  { %1011 = vmatmul.mubr.msk.bf16.vlgmr.msra.gmra.mrb[0].mxu1 %vm512_vm11, %v586_v24  ;;  %v223_v24 = vld [vmem:[%s1528_s0 + $0x2] sm:$0x1] }
 0x2da   :  { %1023 = vmatpush3.bf16.msra.mxu1 %v1166_v0  ;;  %1026 = vmatprep.mubr.msk.bf16.mxu1 %vm1123_vm0, %v1122_v1 }
 0x2db   :  { %1024 = vmatprep.subr.bf16.mxu1 %v1122_v1 }
 0x2de   :  { %1025 = vmatpush3.bf16.msra.mxu1 %v1174_v2 }
 0x2df   :  { %1038 = vmatprep.subr.bf16.mxu1 %v1122_v1 }
 0x2e9   :  { %v155_v25 = vpop.permute.xlu1 %154 }
 0x2ea   :  { %v184_v29 = vmul.f32 %v1220_v13, %v155_v25  ;;  %v229_v25 = vld [vmem:[%s1528_s0 + $0x32] sm:$0x1] }
 0x2ec   :  { %v192_v35 = vadd.f32 %v1226_v17, %v184_v29  ;;  %v225_v29 = vld [vmem:[%s1528_s0 + $0x12] sm:$0x1] }
 0x2ed   :  { %v160_v27 = vpop.permute.xlu1 %159 }
 0x2ee   :  { %v185_v33 = vmul.f32 %v1220_v13, %v160_v27  ;;  %v208_v43 = vrot.slane %v192_v35, 6 }
 0x2f0   :  { %v193_v37 = vadd.f32 %v1226_v17, %v185_v33  ;;  %v209_v51 = vsel %vm115_vm2, %v208_v43, %v207_v50 }
 0x2f1   :  { %v170_v30 = vpop.permute.xlu1 %169 }
 0x2f2   :  { %v187_v38 = vmul.f32 %v1220_v13, %v170_v30  ;;  %v210_v45 = vrot.slane %v193_v37, 5  ;;  %v226_v30 = vld [vmem:[%s1528_s0 + $0x1a] sm:$0x1] }
 0x2f4   :  { %v195_v46 = vadd.f32 %v1226_v17, %v187_v38  ;;  %v211_v52 = vsel %vm118_vm3, %v210_v45, %v209_v51 }
 0x2f5   :  { %v180_v40 = vpop.permute.xlu1 %179  ;;  %v213_v57 = vsel %vm121_vm4, %v212_v55, %v211_v52 }
 0x2f6   :  { %v189_v47 = vmul.f32 %v1220_v13, %v180_v40  ;;  %v214_v53 = vrot.slane %v195_v46, 3 }
 0x2f8   :  { %v197_v54 = vadd.f32 %v1226_v17, %v189_v47  ;;  %v215_v59 = vsel %vm124_vm5, %v214_v53, %v213_v57 }
 0x2f9   :  { %v217_v61 = vsel %vm127_vm6, %v216_v60, %v215_v59 }
 0x2fa   :  { %v218_v58 = vrot.slane %v197_v54, 1 }
 0x2fc   :  { %v219_v63 = vsel %vm130_vm7, %v218_v58, %v217_v61 }
 0x3ac   :  { %v624_v3 = vpop.f32.mrb[0].mxu1 }
 0x3ad   :  { %v630_v4 = vadd.f32 %v624_v3, %v219_v63  ;;  %v1012_v5 = vpop.f32.mrb[1].mxu1 }
 0x3ae   :  { %v627_v6 = vpop.f32.mrb[2].mxu1 }
 0x3af   :  { %v969_v7 = vmul.f32 -1.442695, %v630_v4  ;;  %v1013_v8 = vpop.f32.mrb[3].mxu1 }
 0x3b1   :  { %1066 = vpow2.f32 %v969_v7 }
 0x3b2   :  { %1068 = vtanh.f32 %v630_v4 }
 0x3bb   :  { %v1067_v10 = vpop.eup %1066 }
 0x3bc   :  { %v635_v11 = vadd.f32 1.0, %v1067_v10  ;;  %v1069_v12 = vpop.eup %1068 }
 0x3be   :  { %1070 = vrcp.f32 %v635_v11 }
 0x3c8   :  { %v1071_v14 = vpop.eup %1070 }
 0x3c9   :  { %v638_v15 = vsel %vm1250_vm10, %v1069_v12, %v1071_v14 }
 0x3ca   :  { %641 = vrot.lane.b32.xlu0 %v638_v15, %s1125_s1  ;;  %v639_v19 = vmul.f32 %v638_v15, %v1258_v9  ;;  %v227_v9 = vld [vmem:[%s1528_s0 + $0x22] sm:$0x1] }
 0x43c   :  { %v642_v16 = vpop.permute.xlu0 %641 }
 0x43d   :  { %v644_v18 = vmul.f32 %v642_v16, %v638_v15 }
 0x43f   :  { %646 = vrot.lane.b32.xlu1 %v644_v18, %s1126_s3 }
 0x4b1   :  { %v647_v20 = vpop.permute.xlu1 %646 }
 0x4b2   :  { %v1322_v21 = vadd.f32 %v647_v20, %v639_v19 }
 0x4b4   :  { %1072 = vtanh.f32 %v1322_v21 }
 0x4be   :  { %v1073_v22 = vpop.eup %1072 }
 0x4bf   :  { %652 = vrot.lane.b32.xlu0 %v1073_v22, %s1125_s1 }
 0x4c3   :  { %238 = vperm.xlu0 %1052, %v224_v23  }
 0x4c7   :  { %233 = vperm.xlu0 %1052, %v223_v24  }
 0x4cb   :  { %253 = vperm.xlu0 %1052, %v227_v9  }
 0x4cf   :  { %263 = vperm.xlu0 %1052, %v229_v25  }
 0x531   :  { %v653_v26 = vpop.permute.xlu0 %652 }
 0x532   :  { %v655_v27 = vmul.f32 %v653_v26, %v638_v15 }
 0x534   :  { %v657_v28 = vpack.c.bf16 %v655_v27, %v655_v27 }
 0x536   :  { %659 = vrot.lane.b32.xlu1 %v657_v28, %s1126_s3 }
 0x53a   :  { %243 = vperm.xlu1 %1053, %v225_v29  }
 0x53e   :  { %248 = vperm.xlu1 %1053, %v226_v30   ;;  %v313_v30 = vld [vmem:[%s1528_s0 + $0xb] sm:$0x1] }
 0x542   :  { %258 = vperm.xlu1 %1053, %v228_v31   ;;  %v239_v35 = vpop.permute.xlu0 %238  ;;  %v312_v31 = vld [vmem:[%s1528_s0 + $0x3] sm:$0x1] }
 0x543   :  { %v272_v40 = vmul.f32 %v1220_v13, %v239_v35 }
 0x545   :  { %v280_v44 = vadd.f32 %v1226_v17, %v272_v40 }
 0x546   :  { %268 = vperm.xlu1 %1053, %v230_v32   ;;  %v234_v37 = vpop.permute.xlu0 %233  ;;  %v318_v32 = vld [vmem:[%s1528_s0 + $0x33] sm:$0x1] }
 0x547   :  { %v295_v51 = vrot.slane %v280_v44, 7 }
 0x54a   :  { %v254_v41 = vpop.permute.xlu0 %253 }
 0x54b   :  { %v275_v46 = vmul.f32 %v1220_v13, %v254_v41 }
 0x54d   :  { %v283_v55 = vadd.f32 %v1226_v17, %v275_v46 }
 0x54e   :  { %v264_v49 = vpop.permute.xlu0 %263 }
 0x54f   :  { %v277_v56 = vmul.f32 %v1220_v13, %v264_v49  ;;  %v301_v63 = vrot.slane %v283_v55, 4 }
 0x551   :  { %v285_v3 = vadd.f32 %v1226_v17, %v277_v56 }
 0x553   :  { %v305_v7 = vrot.slane %v285_v3, 2 }
 0x5a8   :  { %v660_v33 = vpop.permute.xlu1 %659 }
 0x5a9   :  { %1019 = vmatmul.mubr.msk.bf16.vlgmr.msra.gmra.mrb[4].mxu0 %vm512_vm11, %v660_v33 }
 0x5aa   :  { %1031 = vmatpush3.bf16.msra.mxu0 %v1166_v0  ;;  %1034 = vmatprep.mubr.msk.bf16.mxu0 %vm1123_vm0, %v1122_v1  ;;  %v271_v0 = vmul.f32 %v1220_v13, %v234_v37  ;;  %v315_v37 = vld [vmem:[%s1528_s0 + $0x1b] sm:$0x1] }
 0x5ab   :  { %1032 = vmatprep.subr.bf16.mxu0 %v1122_v1 }
 0x5ac   :  { %v279_v48 = vadd.f32 %v1226_v17, %v271_v0 }
 0x5ae   :  { %1033 = vmatpush3.bf16.msra.mxu0 %v1174_v2  ;;  %v296_v57 = vsel %vm112_vm1, %v295_v51, %v279_v48 }
 0x5b9   :  { %v244_v34 = vpop.permute.xlu1 %243 }
 0x5ba   :  { %v273_v38 = vmul.f32 %v1220_v13, %v244_v34 }
 0x5bc   :  { %v281_v43 = vadd.f32 %v1226_v17, %v273_v38  ;;  %v317_v38 = vld [vmem:[%s1528_s0 + $0x2b] sm:$0x1] }
 0x5bd   :  { %v249_v36 = vpop.permute.xlu1 %248 }
 0x5be   :  { %v274_v42 = vmul.f32 %v1220_v13, %v249_v36  ;;  %v297_v50 = vrot.slane %v281_v43, 6  ;;  %v314_v36 = vld [vmem:[%s1528_s0 + $0x13] sm:$0x1] }
 0x5c0   :  { %v282_v2 = vadd.f32 %v1226_v17, %v274_v42  ;;  %v298_v58 = vsel %vm115_vm2, %v297_v50, %v296_v57 }
 0x5c1   :  { %v259_v39 = vpop.permute.xlu1 %258 }
 0x5c2   :  { %v276_v45 = vmul.f32 %v1220_v13, %v259_v39  ;;  %v299_v52 = vrot.slane %v282_v2, 5  ;;  %v319_v39 = vld [vmem:[%s1528_s0 + $0x3b] sm:$0x1] }
 0x5c4   :  { %v284_v53 = vadd.f32 %v1226_v17, %v276_v45  ;;  %v300_v59 = vsel %vm118_vm3, %v299_v52, %v298_v58 }
 0x5c5   :  { %v269_v47 = vpop.permute.xlu1 %268  ;;  %v302_v4 = vsel %vm121_vm4, %v301_v63, %v300_v59 }
 0x5c6   :  { %v278_v54 = vmul.f32 %v1220_v13, %v269_v47  ;;  %v303_v60 = vrot.slane %v284_v53, 3 }
 0x5c8   :  { %v286_v61 = vadd.f32 %v1226_v17, %v278_v54  ;;  %v304_v6 = vsel %vm124_vm5, %v303_v60, %v302_v4 }
 0x5c9   :  { %v306_v8 = vsel %vm127_vm6, %v305_v7, %v304_v6 }
 0x5ca   :  { %v307_v5 = vrot.slane %v286_v61, 1 }
 0x5cc   :  { %v308_v10 = vsel %vm130_vm7, %v307_v5, %v306_v8 }
 0x67c   :  { %v698_v11 = vpop.f32.mrb[4].mxu0 }
 0x67d   :  { %v704_v12 = vadd.f32 %v698_v11, %v308_v10  ;;  %v1020_v14 = vpop.f32.mrb[5].mxu0 }
 0x67e   :  { %v701_v15 = vpop.f32.mrb[6].mxu0 }
 0x67f   :  { %v971_v16 = vmul.f32 -1.442695, %v704_v12  ;;  %v1021_v18 = vpop.f32.mrb[7].mxu0 }
 0x681   :  { %1074 = vpow2.f32 %v971_v16 }
 0x682   :  { %1076 = vtanh.f32 %v704_v12 }
 0x68b   :  { %v1075_v19 = vpop.eup %1074 }
 0x68c   :  { %v709_v20 = vadd.f32 1.0, %v1075_v19  ;;  %v1077_v22 = vpop.eup %1076 }
 0x68e   :  { %1078 = vrcp.f32 %v709_v20 }
 0x698   :  { %v1079_v23 = vpop.eup %1078 }
 0x699   :  { %v712_v24 = vsel %vm1250_vm10, %v1077_v22, %v1079_v23 }
 0x69a   :  { %715 = vrot.lane.b32.xlu0 %v712_v24, %s1125_s1  ;;  %v713_v26 = vmul.f32 %v712_v24, %v1322_v21  ;;  %v316_v21 = vld [vmem:[%s1528_s0 + $0x23] sm:$0x1] }
 0x70c   :  { %v716_v9 = vpop.permute.xlu0 %715 }
 0x70d   :  { %v718_v25 = vmul.f32 %v716_v9, %v712_v24 }
 0x70f   :  { %720 = vrot.lane.b32.xlu1 %v718_v25, %s1126_s3 }
 0x781   :  { %v721_v27 = vpop.permute.xlu1 %720 }
 0x782   :  { %v1385_v28 = vadd.f32 %v721_v27, %v713_v26 }
 0x784   :  { %1080 = vtanh.f32 %v1385_v28 }
 0x78e   :  { %v1081_v29 = vpop.eup %1080 }
 0x78f   :  { %726 = vrot.lane.b32.xlu0 %v1081_v29, %s1125_s1 }
 0x793   :  { %327 = vperm.xlu0 %1052, %v313_v30  }
 0x797   :  { %322 = vperm.xlu0 %1052, %v312_v31  }
 0x79b   :  { %342 = vperm.xlu0 %1052, %v316_v21  }
 0x79f   :  { %352 = vperm.xlu0 %1052, %v318_v32  }
 0x801   :  { %v727_v33 = vpop.permute.xlu0 %726 }
 0x802   :  { %v729_v34 = vmul.f32 %v727_v33, %v712_v24 }
 0x804   :  { %v731_v35 = vpack.c.bf16 %v729_v34, %v729_v34 }
 0x806   :  { %733 = vrot.lane.b32.xlu1 %v731_v35, %s1126_s3 }
 0x80a   :  { %332 = vperm.xlu1 %1053, %v314_v36  }
 0x80e   :  { %337 = vperm.xlu1 %1053, %v315_v37   ;;  %v402_v37 = vld [vmem:[%s1528_s0 + $0xc] sm:$0x1] }
 0x812   :  { %347 = vperm.xlu1 %1053, %v317_v38   ;;  %v328_v42 = vpop.permute.xlu0 %327  ;;  %v401_v38 = vld [vmem:[%s1528_s0 + $0x4] sm:$0x1] }
 0x813   :  { %v361_v45 = vmul.f32 %v1220_v13, %v328_v42 }
 0x815   :  { %v369_v50 = vadd.f32 %v1226_v17, %v361_v45 }
 0x816   :  { %357 = vperm.xlu1 %1053, %v319_v39   ;;  %v323_v43 = vpop.permute.xlu0 %322  ;;  %v407_v39 = vld [vmem:[%s1528_s0 + $0x34] sm:$0x1] }
 0x817   :  { %v360_v48 = vmul.f32 %v1220_v13, %v323_v43  ;;  %v384_v58 = vrot.slane %v369_v50, 7  ;;  %v404_v43 = vld [vmem:[%s1528_s0 + $0x1c] sm:$0x1] }
 0x819   :  { %v368_v55 = vadd.f32 %v1226_v17, %v360_v48 }
 0x81a   :  { %v343_v46 = vpop.permute.xlu0 %342 }
 0x81b   :  { %v364_v53 = vmul.f32 %v1220_v13, %v343_v46  ;;  %v385_v4 = vsel %vm112_vm1, %v384_v58, %v368_v55 }
 0x81d   :  { %v372_v63 = vadd.f32 %v1226_v17, %v364_v53 }
 0x81e   :  { %v353_v56 = vpop.permute.xlu0 %352 }
 0x81f   :  { %v366_v3 = vmul.f32 %v1220_v13, %v353_v56  ;;  %v390_v10 = vrot.slane %v372_v63, 4 }
 0x821   :  { %v374_v11 = vadd.f32 %v1226_v17, %v366_v3 }
 0x823   :  { %v394_v16 = vrot.slane %v374_v11, 2 }
 0x878   :  { %v734_v40 = vpop.permute.xlu1 %733 }
 0x879   :  { %1027 = vmatmul.mubr.msk.bf16.vlgmr.msra.gmra.mrb[4].mxu1 %vm512_vm11, %v734_v40 }
 0x87a   :  { %1042 = vmatprep.mubr.msk.bf16.mxu1 %vm1123_vm0, %v1122_v1 }
 0x889   :  { %v333_v41 = vpop.permute.xlu1 %332 }
 0x88a   :  { %v362_v44 = vmul.f32 %v1220_v13, %v333_v41 }
 0x88c   :  { %v370_v49 = vadd.f32 %v1226_v17, %v362_v44  ;;  %v406_v44 = vld [vmem:[%s1528_s0 + $0x2c] sm:$0x1] }
 0x88d   :  { %v338_v0 = vpop.permute.xlu1 %337 }
 0x88e   :  { %v363_v47 = vmul.f32 %v1220_v13, %v338_v0  ;;  %v386_v57 = vrot.slane %v370_v49, 6  ;;  %v403_v0 = vld [vmem:[%s1528_s0 + $0x14] sm:$0x1] }
 0x890   :  { %v371_v51 = vadd.f32 %v1226_v17, %v363_v47  ;;  %v387_v5 = vsel %vm115_vm2, %v386_v57, %v385_v4 }
 0x891   :  { %v348_v2 = vpop.permute.xlu1 %347 }
 0x892   :  { %v365_v52 = vmul.f32 %v1220_v13, %v348_v2  ;;  %v388_v59 = vrot.slane %v371_v51, 5  ;;  %v408_v2 = vld [vmem:[%s1528_s0 + $0x3c] sm:$0x1] }
 0x894   :  { %v373_v60 = vadd.f32 %v1226_v17, %v365_v52  ;;  %v389_v6 = vsel %vm118_vm3, %v388_v59, %v387_v5 }
 0x895   :  { %v358_v54 = vpop.permute.xlu1 %357  ;;  %v391_v12 = vsel %vm121_vm4, %v390_v10, %v389_v6 }
 0x896   :  { %v367_v61 = vmul.f32 %v1220_v13, %v358_v54  ;;  %v392_v7 = vrot.slane %v373_v60, 3 }
 0x898   :  { %v375_v8 = vadd.f32 %v1226_v17, %v367_v61  ;;  %v393_v15 = vsel %vm124_vm5, %v392_v7, %v391_v12 }
 0x899   :  { %v395_v18 = vsel %vm127_vm6, %v394_v16, %v393_v15 }
 0x89a   :  { %v396_v14 = vrot.slane %v375_v8, 1 }
 0x89c   :  { %v397_v19 = vsel %vm130_vm7, %v396_v14, %v395_v18 }
 0x94c   :  { %v772_v20 = vpop.f32.mrb[4].mxu1 }
 0x94d   :  { %v778_v22 = vadd.f32 %v772_v20, %v397_v19  ;;  %v1028_v23 = vpop.f32.mrb[5].mxu1 }
 0x94e   :  { %v775_v24 = vpop.f32.mrb[6].mxu1 }
 0x94f   :  { %v973_v9 = vmul.f32 -1.442695, %v778_v22  ;;  %v1029_v25 = vpop.f32.mrb[7].mxu1 }
 0x951   :  { %1082 = vpow2.f32 %v973_v9 }
 0x952   :  { %1084 = vtanh.f32 %v778_v22 }
 0x95b   :  { %v1083_v26 = vpop.eup %1082 }
 0x95c   :  { %v783_v27 = vadd.f32 1.0, %v1083_v26  ;;  %v1085_v29 = vpop.eup %1084 }
 0x95e   :  { %1086 = vrcp.f32 %v783_v27 }
 0x968   :  { %v1087_v30 = vpop.eup %1086 }
 0x969   :  { %v786_v31 = vsel %vm1250_vm10, %v1085_v29, %v1087_v30 }
 0x96a   :  { %789 = vrot.lane.b32.xlu0 %v786_v31, %s1125_s1  ;;  %v787_v33 = vmul.f32 %v786_v31, %v1385_v28  ;;  %v405_v28 = vld [vmem:[%s1528_s0 + $0x24] sm:$0x1] }
 0x9dc   :  { %v790_v21 = vpop.permute.xlu0 %789 }
 0x9dd   :  { %v792_v32 = vmul.f32 %v790_v21, %v786_v31 }
 0x9df   :  { %794 = vrot.lane.b32.xlu1 %v792_v32, %s1126_s3 }
 0xa51   :  { %v795_v34 = vpop.permute.xlu1 %794 }
 0xa52   :  { %v1445_v35 = vadd.f32 %v795_v34, %v787_v33 }
 0xa54   :  { %1088 = vtanh.f32 %v1445_v35 }
 0xa5e   :  { %v1089_v36 = vpop.eup %1088 }
 0xa5f   :  { %800 = vrot.lane.b32.xlu0 %v1089_v36, %s1125_s1 }
 0xa63   :  { %416 = vperm.xlu0 %1052, %v402_v37  }
 0xa67   :  { %411 = vperm.xlu0 %1052, %v401_v38  }
 0xa6b   :  { %431 = vperm.xlu0 %1052, %v405_v28  }
 0xa6f   :  { %441 = vperm.xlu0 %1052, %v407_v39  }
 0xad1   :  { %v801_v40 = vpop.permute.xlu0 %800 }
 0xad2   :  { %v803_v41 = vmul.f32 %v801_v40, %v786_v31 }
 0xad4   :  { %v805_v42 = vpack.c.bf16 %v803_v41, %v803_v41  ;;  %v1056_v41 = vld [vmem:[%s1532_s4] sm:$0xff]   ;;  %s955_s4 = sshll.u32 %s1127_s14, 4  ;;  %s956_s4 = int_to_ptr.vmem [resolvable:$true] %s955_s4 }
 0xad5   :  { %1039 = vmatpush3.bf16.msra.mxu1 %v1056_v41  ;;  %p1103_p1 = scmp.lt.s32.totalorder %s956_s4, %s956_s4 }
 0xad6   :  { %807 = vrot.lane.b32.xlu1 %v805_v42, %s1126_s3  ;;  %1040 = vmatprep.subr.bf16.mxu1 %v1122_v1 }
 0xad9   :  { %1041 = vmatpush3.bf16.msra.mxu1 %v1057_v62 }
 0xada   :  { %421 = vperm.xlu1 %1053, %v403_v0  }
 0xade   :  { %426 = vperm.xlu1 %1053, %v404_v43  }
 0xae2   :  { %436 = vperm.xlu1 %1053, %v406_v44   ;;  %v417_v47 = vpop.permute.xlu0 %416 }
 0xae3   :  { %v450_v52 = vmul.f32 %v1220_v13, %v417_v47 }
 0xae5   :  { %v458_v57 = vadd.f32 %v1226_v17, %v450_v52 }
 0xae6   :  { %446 = vperm.xlu1 %1053, %v408_v2   ;;  %v412_v49 = vpop.permute.xlu0 %411  ;;  %v976_v2 = vld [vmem:[%s1533_s5] ss:$0 sm:$0xff] }
 0xae7   :  { %v449_v55 = vmul.f32 %v1220_v13, %v412_v49  ;;  %v473_v5 = vrot.slane %v458_v57, 7 }
 0xae9   :  { %v457_v63 = vadd.f32 %v1226_v17, %v449_v55 }
 0xaea   :  { %v432_v53 = vpop.permute.xlu0 %431 }
 0xaeb   :  { %v453_v60 = vmul.f32 %v1220_v13, %v432_v53  ;;  %v474_v12 = vsel %vm112_vm1, %v473_v5, %v457_v63 }
 0xaed   :  { %v461_v10 = vadd.f32 %v1226_v17, %v453_v60 }
 0xaee   :  { %v442_v3 = vpop.permute.xlu0 %441 }
 0xaef   :  { %v455_v11 = vmul.f32 %v1220_v13, %v442_v3  ;;  %v479_v19 = vrot.slane %v461_v10, 4 }
 0xaf1   :  { %v463_v20 = vadd.f32 %v1226_v17, %v455_v11 }
 0xaf3   :  { %v483_v9 = vrot.slane %v463_v20, 2 }
 0xb48   :  { %v808_v45 = vpop.permute.xlu1 %807 }
 0xb49   :  { %1035 = vmatmul.mubr.msk.bf16.vlgmr.msra.gmra.mrb[8].mxu0 %vm512_vm11, %v808_v45 }
 0xb59   :  { %v422_v46 = vpop.permute.xlu1 %421 }
 0xb5a   :  { %v451_v50 = vmul.f32 %v1220_v13, %v422_v46 }
 0xb5c   :  { %v459_v56 = vadd.f32 %v1226_v17, %v451_v50 }
 0xb5d   :  { %v427_v48 = vpop.permute.xlu1 %426 }
 0xb5e   :  { %v452_v54 = vmul.f32 %v1220_v13, %v427_v48  ;;  %v475_v4 = vrot.slane %v459_v56, 6 }
 0xb60   :  { %v460_v58 = vadd.f32 %v1226_v17, %v452_v54  ;;  %v476_v14 = vsel %vm115_vm2, %v475_v4, %v474_v12 }
 0xb61   :  { %v437_v51 = vpop.permute.xlu1 %436 }
 0xb62   :  { %v454_v59 = vmul.f32 %v1220_v13, %v437_v51  ;;  %v477_v6 = vrot.slane %v460_v58, 5 }
 0xb64   :  { %v462_v7 = vadd.f32 %v1226_v17, %v454_v59  ;;  %v478_v15 = vsel %vm118_vm3, %v477_v6, %v476_v14 }
 0xb65   :  { %v447_v61 = vpop.permute.xlu1 %446  ;;  %v480_v22 = vsel %vm121_vm4, %v479_v19, %v478_v15 }
 0xb66   :  { %v456_v8 = vmul.f32 %v1220_v13, %v447_v61  ;;  %v481_v16 = vrot.slane %v462_v7, 3 }
 0xb68   :  { %v464_v18 = vadd.f32 %v1226_v17, %v456_v8  ;;  %v482_v24 = vsel %vm124_vm5, %v481_v16, %v480_v22 }
 0xb69   :  { %v484_v13 = vsel %vm127_vm6, %v483_v9, %v482_v24 }
 0xb6a   :  { %v485_v23 = vrot.slane %v464_v18, 1 }
 0xb6c   :  { %v486_v25 = vsel %vm130_vm7, %v485_v23, %v484_v13 }
 0xc1c   :  { %v846_v26 = vpop.f32.mrb[8].mxu0 }
 0xc1d   :  { %v852_v27 = vadd.f32 %v846_v26, %v486_v25  ;;  %v1036_v29 = vpop.f32.mrb[9].mxu0 }
 0xc1e   :  { %v849_v30 = vpop.f32.mrb[10].mxu0 }
 0xc1f   :  { %v975_v31 = vmul.f32 -1.442695, %v852_v27  ;;  %v1037_v21 = vpop.f32.mrb[11].mxu0 }
 0xc21   :  { %1090 = vpow2.f32 %v975_v31 }
 0xc22   :  { %1092 = vtanh.f32 %v852_v27 }
 0xc2b   :  { %v1091_v32 = vpop.eup %1090 }
 0xc2c   :  { %v857_v33 = vadd.f32 1.0, %v1091_v32  ;;  %v1093_v17 = vpop.eup %1092 }
 0xc2e   :  { %1094 = vrcp.f32 %v857_v33 }
 0xc38   :  { %v1095_v34 = vpop.eup %1094 }
 0xc39   :  { %v860_v36 = vsel %vm1250_vm10, %v1093_v17, %v1095_v34 }
 0xc3a   :  { %863 = vrot.lane.b32.xlu0 %v860_v36, %s1125_s1  ;;  %v861_v28 = vmul.f32 %v860_v36, %v1445_v35 }
 0xcac   :  { %v864_v37 = vpop.permute.xlu0 %863 }
 0xcad   :  { %v866_v38 = vmul.f32 %v864_v37, %v860_v36 }
 0xcaf   :  { %868 = vrot.lane.b32.xlu1 %v866_v38, %s1126_s3 }
 0xd21   :  { %v869_v39 = vpop.permute.xlu1 %868 }
 0xd22   :  { %v871_v40 = vadd.f32 %v869_v39, %v861_v28 }
 0xd24   :  { %1096 = vtanh.f32 %v871_v40 }
 0xd2e   :  { %v1097_v42 = vpop.eup %1096 }
 0xd2f   :  { %874 = vrot.lane.b32.xlu0 %v1097_v42, %s1125_s1  ;;  %s1098_s1 = scalar_lea.vmem %s956_s4, 128 }
 0xd30   :  { %p1099_p0 = scmp.ne.s32.totalorder %s956_s4, %s1098_s1  ;;  %p1104_p2 = scmp.lt.s32.totalorder %s1098_s1, %s1098_s1 }
 0xd32   :  { %p1105_p3 = por %p1104_p2, %p1103_p1 }
 0xd34   :  { %p1106_p4 = pnand %p1105_p3, %p1099_p0 }
 0xda1   :  { %v875_v0 = vpop.permute.xlu0 %874 }
 0xda2   :  { %v877_v35 = vmul.f32 %v875_v0, %v860_v36 }
 0xda4   :  { %v878_v43 = vpack.c.bf16 %v877_v35, %v877_v35 }
 0xda6   :  { %891 = vrot.lane.b32.xlu1 %v878_v43, %s1126_s3 }
 0xe18   :  { %v892_v44 = vpop.permute.xlu1 %891 }
 0xe19   :  { %1043 = vmatmul.mubr.msk.bf16.vlgmr.msra.gmra.mrb[8].mxu1 %vm512_vm11, %v892_v44 }
 0xeec   :  { %v942_v45 = vpop.f32.mrb[8].mxu1 }
 0xeed   :  { %v943_v1 = vadd.f32 %v976_v2, %v942_v45  ;;  %v1044_v46 = vpop.f32.mrb[9].mxu1 }
 0xeee   :  { %v945_v47 = vpop.f32.mrb[10].mxu1 }
 0xeef   :  { %948 = vst [vmem:[#allocation3] sm:$0xff] %v943_v1  ;;  %v1045_v48 = vpop.f32.mrb[11].mxu1 }
 0xef0   :  { %1109 = shalt.err (!%p1106_p4)
}
 0xef1   :  { %s1110_s5 = scalar_lea.hbm %s1534_s6, 128 }
 0xef2   :  { %p1111_p5 = scmp.ne.s32.totalorder %s1534_s6, %s1110_s5  ;;  %p1114_p6 = scmp.lt.u32.totalorder %s1110_s5, %s1534_s6 }
 0xef4   :  { %p1116_p7 = pnand %p1114_p6, %p1111_p5 }
 0xef6   :  { %1119 = shalt.err (!%p1116_p7)
}
 0xef7   :  { %958 = dma.vmem_to_hbm [thread:$0]  %s956_s4, 128, %s1534_s6, [#allocation4]  }
 0xef8   :  { %1120 = dma.done.wait [#allocation4], 128  }
 0xef9   :  { %1121 = vsyncadd [#allocation4], 4294967168 }
 0xefa   :  { %962 = vsyncpa [#allocation4], 1 }

</bundles_post_ra>
